<compile_context>
chip_gen: v6e
topology: v6e:2x2x1
jax: 0.10.0
libtpu: 0.0.40
codegen_flags: <defaults>
</compile_context>

<pallas_src>
import functools

import jax
import jax.numpy as jnp
from jax import lax
from jax.experimental import pallas as pl
from jax.experimental.pallas import tpu as pltpu


def _round_up(x, m):
    return (x + m - 1) // m * m


# ----------------------------- Pallas conv kernel -----------------------------

def _conv3x3_kernel(w_ref, b_ref, s_ref, o_ref, *, wr, lanes_out):
    """One (batch, row-tile) step of the 3x3 / stride-1 / pad-1 conv.

    w_ref: VMEM (3, C_out_p, 3*C_in_p) bf16 -- per-dy weights, K = (dx, c_in)
    b_ref: VMEM (C_out_p, 1)           f32
    s_ref: VMEM (3*C_in_p, (R+2)*Wr)   bf16 -- dx-shifted row-aligned tile
                                               (2-row halo included)
    o_ref: VMEM (C_out_p, R*Wr)        f32  -- lane-dense output tile
    """
    # Accumulator initialized from the broadcast bias: removes the zeros pass
    # and the trailing full-width bias add.  <= 8 vregs at these shapes.
    acc = jnp.broadcast_to(b_ref[...], o_ref.shape).astype(jnp.float32)
    for dy in range(3):
        # Static, 128-aligned lane window = rows dy .. dy+R-1 of the halo tile.
        xs = s_ref[:, dy * wr:dy * wr + lanes_out]          # (3*C_in_p, R*Wr)
        acc = acc + jnp.dot(w_ref[dy], xs,
                            preferred_element_type=jnp.float32)
    o_ref[...] = acc


def conv3x3_pallas(x, weight, bias):
    """x: (N, C_in, H, W) f32, weight: (C_out, C_in, 3, 3) f32, bias: (C_out,)."""
    n, c_in, h, w = x.shape
    c_out = weight.shape[0]
    c_in_p = _round_up(c_in, 8)
    c_out_p = _round_up(c_out, 8)
    k3 = 3 * c_in_p

    wr = _round_up(w + 2, 128)            # 128-aligned padded row stride (lanes)
    hp = h + 2                            # padded row count

    # Row-tile size: largest of (8,4,2,1) dividing H (H is a power of two at
    # UNet3+ scales).  Each grid step computes `rows` output rows.
    rows = 1
    for cand in (8, 4, 2, 1):
        if h % cand == 0:
            rows = cand
            break
    n_tiles = h // rows
    lanes_out = rows * wr                 # output lanes per tile (mult. of 128)
    lt = (rows + 2) * wr                  # input lanes per tile (2-row halo)

    # ---- wrapper-side layout plumbing (pure data movement, bf16) -----------
    # Single pad: 1-px zero border + channel pad to a multiple of 8 + lane-tail
    # zeros so the row stride is 128-aligned.  Data sits at [:, 1:h+1, 1:w+1].
    xq = x.astype(jnp.bfloat16)
    xpad = jnp.pad(xq, ((0, 0), (0, c_in_p - c_in), (1, 1), (1, wr - w - 1)))

    # Three dx-shifted copies stacked along the contraction axis:
    #   s[n, dx*C_in_p + c, r, j] = xpad[n, c, r, j + dx]
    shifted = [xpad]
    for dx in (1, 2):
        shifted.append(jnp.pad(xpad[..., dx:], ((0, 0), (0, 0), (0, 0), (0, dx))))
    s = jnp.stack(shifted, axis=1).reshape(n, k3, hp, wr)

    # Row tiles with a replicated 2-row halo, flattened to one lane-aligned
    # 2D slab per (batch, tile) so every in-kernel slice is static + aligned.
    s_tiled = jnp.stack(
        [s[:, :, t * rows:t * rows + rows + 2, :] for t in range(n_tiles)],
        axis=1).reshape(n * n_tiles, k3, lt)

    # Weights as 3 per-dy (C_out_p, 3*C_in_p) matrices, K index = dx*C_in_p + c_in.
    wq = jnp.pad(weight.astype(jnp.bfloat16),
                 ((0, c_out_p - c_out), (0, c_in_p - c_in), (0, 0), (0, 0)))
    w3 = jnp.transpose(wq, (2, 0, 3, 1)).reshape(3, c_out_p, k3)
    b2 = jnp.pad(bias.astype(jnp.float32), (0, c_out_p - c_out)).reshape(c_out_p, 1)

    kernel = functools.partial(_conv3x3_kernel, wr=wr, lanes_out=lanes_out)

    # Scoped-VMEM budget: double-buffered activation + output blocks + params.
    s_block = k3 * lt * 2
    o_block = c_out_p * lanes_out * 4
    vmem_limit = min(max(2 * (s_block + o_block)
                         + 2 * (w3.size * 2 + b2.size * 4) + (4 << 20),
                         8 << 20), 32 << 20)

    out = pl.pallas_call(
        kernel,
        out_shape=jax.ShapeDtypeStruct((n, c_out_p, h * wr), jnp.float32),
        grid=(n, n_tiles),
        in_specs=[
            pl.BlockSpec((3, c_out_p, k3), lambda i, t: (0, 0, 0)),          # weights
            pl.BlockSpec((c_out_p, 1), lambda i, t: (0, 0)),                 # bias
            pl.BlockSpec((None, k3, lt),
                         lambda i, t: (i * n_tiles + t, 0, 0)),              # activations
        ],
        out_specs=pl.BlockSpec((None, c_out_p, lanes_out), lambda i, t: (i, 0, t)),
        compiler_params=pltpu.CompilerParams(
            dimension_semantics=("parallel", "parallel"),
            vmem_limit_bytes=vmem_limit),
        cost_estimate=pl.CostEstimate(
            flops=2 * n * n_tiles * 3 * c_out_p * k3 * lanes_out,
            transcendentals=0,
            bytes_accessed=(s_tiled.size * 2 + n * c_out_p * h * wr * 4
                            + w3.size * 2 + b2.size * 4)),
    )(w3, b2, s_tiled)

    # Crop padded channels and the lane tail.
    # TODO(synk): let downstream consumers take the (C_out_p, H, Wr) layout and
    # crop lazily at the UNet3+ concat instead of a separate crop pass here.
    return out.reshape(n, c_out_p, h, wr)[:, :c_out, :, :w]


# ------------------------------- resize glue ----------------------------------
# TODO(synk): resize stage (MaxPool2d / UpsamplingBilinear2d align_corners=True)
# is plain-JAX glue feeding the Pallas conv kernel; it could be fused in-kernel.

def _maxpool2d(x, k):
    return lax.reduce_window(x, -jnp.inf, lax.max,
                             window_dimensions=(1, 1, k, k),
                             window_strides=(1, 1, k, k),
                             padding="VALID")


def _interp_matrix_align_corners(n_in, n_out, dtype=jnp.float32):
    if n_in == 1:
        return jnp.ones((n_out, 1), dtype=dtype)
    pos = jnp.arange(n_out, dtype=jnp.float32) * (n_in - 1) / (n_out - 1)
    lo = jnp.clip(jnp.floor(pos).astype(jnp.int32), 0, n_in - 2)
    frac = pos - lo.astype(jnp.float32)
    idx = jnp.arange(n_out)
    m = jnp.zeros((n_out, n_in), dtype)
    m = m.at[idx, lo].add(1.0 - frac)
    m = m.at[idx, lo + 1].add(frac)
    return m


def _upsample_bilinear_align_corners(x, s):
    # Matches torch.nn.UpsamplingBilinear2d(scale_factor=s) (align_corners=True).
    _, _, h, w = x.shape
    mh = _interp_matrix_align_corners(h, h * s)
    mw = _interp_matrix_align_corners(w, w * s)
    return jnp.einsum("oh,nchw,pw->ncop", mh, x, mw)


# ------------------------------- module wrapper --------------------------------

class Unet3PlusFullScaleResidual:
    def __init__(self, source_depth, target_depth, total_depth, base_channels, key):
        if source_depth == target_depth:
            self._resize = lambda x: x
            input_channels = base_channels * 2 ** source_depth
        elif source_depth < target_depth:
            k = 2 ** (target_depth - source_depth)
            self._resize = functools.partial(_maxpool2d, k=k)
            input_channels = base_channels * 2 ** source_depth
        else:
            s = 2 ** (source_depth - target_depth)
            self._resize = functools.partial(_upsample_bilinear_align_corners, s=s)
            if source_depth == total_depth - 1:
                input_channels = base_channels * 2 ** source_depth
            else:
                input_channels = base_channels * total_depth
        self.input_channels = input_channels
        # Deterministic init (PyTorch Conv2d default: U(-1/sqrt(fan_in), +1/sqrt(fan_in))).
        kw, kb = jax.random.split(key)
        bound = 1.0 / float((input_channels * 9) ** 0.5)
        self.weight = jax.random.uniform(
            kw, (base_channels, input_channels, 3, 3), jnp.float32, -bound, bound)
        self.bias = jax.random.uniform(
            kb, (base_channels,), jnp.float32, -bound, bound)
        self._fwd = jax.jit(self._forward)

    def _forward(self, x):
        x = self._resize(x)
        return conv3x3_pallas(x, self.weight, self.bias)

    def __call__(self, x):
        return self._fwd(x)


# --------------------------------- reference ----------------------------------

def _conv_reference(x, weight, bias):
    y = lax.conv_general_dilated(x, weight, window_strides=(1, 1),
                                 padding=((1, 1), (1, 1)),
                                 dimension_numbers=("NCHW", "OIHW", "NCHW"),
                                 precision=lax.Precision.HIGHEST)
    return y + bias[None, :, None, None]


if __name__ == "__main__":
    key = jax.random.PRNGKey(0)
    key_mod, key_x = jax.random.split(key)
    base_channels = 4
    total_depth = 3
    # (name, source_depth, target_depth, x_shape NCHW)
    configs = [
        ("identity", 1, 1, (2, 8, 16, 16)),    # C_in = 4*2^1 = 8
        ("maxpool", 0, 1, (2, 4, 16, 16)),     # pool k=2, C_in = 4
        ("upsample", 2, 1, (2, 16, 8, 8)),     # bilinear x2, C_in = 4*2^2 = 16
    ]
    for name, sd, td, shape in configs:
        km = jax.random.fold_in(key_mod, sd * 10 + td)
        kx = jax.random.fold_in(key_x, sd * 10 + td)
        mod = Unet3PlusFullScaleResidual(sd, td, total_depth, base_channels, km)
        assert shape[1] == mod.input_channels, (name, shape, mod.input_channels)
        x = jax.random.normal(kx, shape, jnp.float32)
        out = jax.block_until_ready(mod(x))
        # Reference with identically bf16-quantized operands (f32 accumulation),
        # so the comparison isolates summation order, not dtype policy.
        xr = mod._resize(x)
        ref = _conv_reference(xr.astype(jnp.bfloat16).astype(jnp.float32),
                              mod.weight.astype(jnp.bfloat16).astype(jnp.float32),
                              mod.bias)
        assert out.shape == ref.shape, (name, out.shape, ref.shape)
        assert jnp.allclose(out, ref, atol=2e-3, rtol=2e-3), name
    print("KERNEL_OK")
</pallas_src>

<mosaic_0001>
module attributes {stable_mosaic.version = 11 : i64} {
  func.func @_conv3x3_kernel(%arg0: i32, %arg1: i32, %arg2: memref<3x8x24xbf16, #tpu.memory_space<vmem>>, %arg3: memref<8x1xf32, #tpu.memory_space<vmem>>, %arg4: memref<1x24x1280xbf16, #tpu.memory_space<vmem>>, %arg5: memref<1x8x1024xf32, #tpu.memory_space<vmem>>) attributes {dimension_semantics = [#tpu.dimension_semantics<parallel>, #tpu.dimension_semantics<parallel>], iteration_bounds = array<i64: 2, 2>, scalar_prefetch = 0 : i64, scratch_operands = 0 : i64, tpu.core_type = #tpu.core_type<tc>, window_params = [{pipeline_mode = #tpu.pipeline_mode<synchronous>, transform_indices = @transform_0, window_bounds = array<i64: 3, 8, 24>}, {pipeline_mode = #tpu.pipeline_mode<synchronous>, transform_indices = @transform_1, window_bounds = array<i64: 8, 1>}, {transform_indices = @transform_2, window_bounds = array<i64: 1, 24, 1280>}, {transform_indices = @transform_3, window_bounds = array<i64: 1, 8, 1024>}]} {
    %c0 = arith.constant 0 : index
    %c0_0 = arith.constant 0 : index
    %0 = vector.load %arg3[%c0, %c0_0] : memref<8x1xf32, #tpu.memory_space<vmem>>, vector<8x1xf32>
    %1 = vector.shape_cast %0 : vector<8x1xf32> to vector<8x1xf32>
    %2 = vector.broadcast %1 : vector<8x1xf32> to vector<8x1024xf32>
    %c0_1 = arith.constant 0 : index
    %c0_2 = arith.constant 0 : index
    %c0_3 = arith.constant 0 : index
    %3 = vector.load %arg4[%c0_1, %c0_2, %c0_3] : memref<1x24x1280xbf16, #tpu.memory_space<vmem>>, vector<1x24x1024xbf16>
    %4 = vector.shape_cast %3 : vector<1x24x1024xbf16> to vector<24x1024xbf16>
    %c0_4 = arith.constant 0 : index
    %c0_5 = arith.constant 0 : index
    %c0_6 = arith.constant 0 : index
    %5 = vector.load %arg2[%c0_4, %c0_5, %c0_6] : memref<3x8x24xbf16, #tpu.memory_space<vmem>>, vector<1x8x24xbf16>
    %6 = vector.shape_cast %5 : vector<1x8x24xbf16> to vector<8x24xbf16>
    %cst = arith.constant dense<0.000000e+00> : vector<8x1024xf32>
    %7 = tpu.matmul %6, %4, %cst {dimension_numbers = #tpu.dot_dimension_numbers<[1], [0], [0], [1], [0, 0, 1, 1], [], []>} : vector<8x24xbf16>, vector<24x1024xbf16>, vector<8x1024xf32> -> vector<8x1024xf32>
    %8 = arith.addf %2, %7 : vector<8x1024xf32>
    %c0_7 = arith.constant 0 : index
    %c0_8 = arith.constant 0 : index
    %c128 = arith.constant 128 : index
    %9 = vector.load %arg4[%c0_7, %c0_8, %c128] : memref<1x24x1280xbf16, #tpu.memory_space<vmem>>, vector<1x24x1024xbf16>
    %10 = vector.shape_cast %9 : vector<1x24x1024xbf16> to vector<24x1024xbf16>
    %c1 = arith.constant 1 : index
    %c0_9 = arith.constant 0 : index
    %c0_10 = arith.constant 0 : index
    %11 = vector.load %arg2[%c1, %c0_9, %c0_10] : memref<3x8x24xbf16, #tpu.memory_space<vmem>>, vector<1x8x24xbf16>
    %12 = vector.shape_cast %11 : vector<1x8x24xbf16> to vector<8x24xbf16>
    %cst_11 = arith.constant dense<0.000000e+00> : vector<8x1024xf32>
    %13 = tpu.matmul %12, %10, %cst_11 {dimension_numbers = #tpu.dot_dimension_numbers<[1], [0], [0], [1], [0, 0, 1, 1], [], []>} : vector<8x24xbf16>, vector<24x1024xbf16>, vector<8x1024xf32> -> vector<8x1024xf32>
    %14 = arith.addf %8, %13 : vector<8x1024xf32>
    %c0_12 = arith.constant 0 : index
    %c0_13 = arith.constant 0 : index
    %c256 = arith.constant 256 : index
    %15 = vector.load %arg4[%c0_12, %c0_13, %c256] : memref<1x24x1280xbf16, #tpu.memory_space<vmem>>, vector<1x24x1024xbf16>
    %16 = vector.shape_cast %15 : vector<1x24x1024xbf16> to vector<24x1024xbf16>
    %c2 = arith.constant 2 : index
    %c0_14 = arith.constant 0 : index
    %c0_15 = arith.constant 0 : index
    %17 = vector.load %arg2[%c2, %c0_14, %c0_15] : memref<3x8x24xbf16, #tpu.memory_space<vmem>>, vector<1x8x24xbf16>
    %18 = vector.shape_cast %17 : vector<1x8x24xbf16> to vector<8x24xbf16>
    %cst_16 = arith.constant dense<0.000000e+00> : vector<8x1024xf32>
    %19 = tpu.matmul %18, %16, %cst_16 {dimension_numbers = #tpu.dot_dimension_numbers<[1], [0], [0], [1], [0, 0, 1, 1], [], []>} : vector<8x24xbf16>, vector<24x1024xbf16>, vector<8x1024xf32> -> vector<8x1024xf32>
    %20 = arith.addf %14, %19 : vector<8x1024xf32>
    %c0_17 = arith.constant 0 : index
    %c0_18 = arith.constant 0 : index
    %c0_19 = arith.constant 0 : index
    %21 = vector.load %arg5[%c0_17, %c0_18, %c0_19] : memref<1x8x1024xf32, #tpu.memory_space<vmem>>, vector<1x8x1024xf32>
    %22 = vector.shape_cast %21 : vector<1x8x1024xf32> to vector<8x1024xf32>
    %23 = vector.shape_cast %20 : vector<8x1024xf32> to vector<1x8x1024xf32>
    tpu.vector_store %arg5[%c0_17, %c0_18, %c0_19], %23 {strides = array<i32>} : memref<1x8x1024xf32, #tpu.memory_space<vmem>>, vector<1x8x1024xf32>,
    return
  }
  func.func @transform_0(%arg0: i32, %arg1: i32) -> (i32, i32, i32) {
    %c0_i32 = arith.constant 0 : i32
    %c0_i32_0 = arith.constant 0 : i32
    %c0_i32_1 = arith.constant 0 : i32
    %c0_i32_2 = arith.constant 0 : i32
    return %c0_i32, %c0_i32_0, %c0_i32_1 : i32, i32, i32
  }
  func.func @transform_1(%arg0: i32, %arg1: i32) -> (i32, i32) {
    %c0_i32 = arith.constant 0 : i32
    %c0_i32_0 = arith.constant 0 : i32
    %c0_i32_1 = arith.constant 0 : i32
    return %c0_i32, %c0_i32_0 : i32, i32
  }
  func.func @transform_2(%arg0: i32, %arg1: i32) -> (i32, i32, i32) {
    %c2_i32 = arith.constant 2 : i32
    %0 = arith.muli %arg0, %c2_i32 : i32
    %1 = arith.addi %0, %arg1 : i32
    %c0_i32 = arith.constant 0 : i32
    %c0_i32_0 = arith.constant 0 : i32
    %c0_i32_1 = arith.constant 0 : i32
    return %1, %c0_i32, %c0_i32_0 : i32, i32, i32
  }
  func.func @transform_3(%arg0: i32, %arg1: i32) -> (i32, i32, i32) {
    %c0_i32 = arith.constant 0 : i32
    %c0_i32_0 = arith.constant 0 : i32
    return %arg0, %c0_i32, %arg1 : i32, i32, i32
  }
}

</mosaic_0001>

<bundles_post_ra>
// kernel: _forward.1
= control target key start
LH: loop header
LB: loop body
LE: loop exit
PB: predicated region body
PF: predicated region fallthrough
CT: control target
= control target key end

     0   :  { %s1364_s12 = smov 0   ;;  %s1366_s13 = smov 0   ;;  %s1569_s0 = inlined_call_operand.vmem [shape: bf16[3,8,24], index: 0, kind: input, shape index: {}]   ;;  %s1570_s1 = inlined_call_operand.vmem [shape: f32[8,1], index: 1, kind: input, shape index: {}]   ;;  %s1571_s2 = inlined_call_operand.vmem [shape: bf16[4,24,1280], index: 2, kind: input, shape index: {}]   ;;  %s1572_s3 = inlined_call_operand.vmem [shape: f32[2,8,2048], index: 3, kind: output, shape index: {}]  }
   0x1   :  { %s1368_s14 = smov 0   ;;  %s1370_s15 = smov 0  }
   0x2   :  { %s1372_s16 = smov 0  }
   0x3 LB: > { %s22_s17 = sadd.s32 1, %s1333_s14  ;;  %s25_s18 = sadd.s32 1, %s1337_s15  ;;  %s1341_s16 = sphi %s1372_s16, %s13_s16   ;;  %s1337_s15 = sphi %s1370_s15, %s1576_s15   ;;  %s1333_s14 = sphi %s1368_s14, %s1575_s14   ;;  %s1329_s13 = sphi %s1366_s13, %s1574_s13   ;;  %s1325_s12 = sphi %s1364_s12, %s1573_s12  }
   0x4   : > { %p23_p0 = scmp.ge.s32.totalorder %s22_s17, 2  ;;  %p1133_p1 = scmp.ge.s32.totalorder %s1341_s16, 1 }
   0x5   : > { %p159_p2 = scmp.lt.s32.totalorder %s1341_s16, 5 }
   0x6   : > { %s1578_s17 = smov (%p23_p0, %s22_s17), 0  ;;  %s1580_s18 = smov (!%p23_p0, %s25_s18), %s1337_s15 }
   0x7   : > { %p160_p3 = pnand %p1133_p1, %p159_p2  ;;  %p27_p4 = scmp.ge.s32.totalorder %s1580_s18, 2 }
   0x8   : > { %s1134_s19 = sshll.u32 (!%p160_p3), %s1329_s13, 1  ;;  %s1136_s6 = sshll.u32 (!%p160_p3), %s1325_s12, 3 }
   0x9   : > { %s1582_s18 = smov (%p27_p4, %s1580_s18), 0  ;;  %163 = sbr.rel (%p160_p3) target bundleno = 268 (0x10c), region = 32 }
   0xa   : > { %s190_s20 = sadd.s32 (!%p160_p3), %s1325_s12, %s1134_s19  ;;  %p199_p6 = scmp.lt.s32.totalorder (!%p160_p3), %s1329_s13, 1 }
   0xb   : > { %p191_p5 = scmp.lt.s32.totalorder (!%p160_p3), %s190_s20, 3  ;;  %p201_p7 = scmp.lt.s32.totalorder (!%p160_p3), %s1136_s6, 15 }
   0xe   : > { %v1343_v0 = vmov 0   ;;  %v209_v1 = vld [vmem:[%s1570_s1] sm:$0xff]  ;;  %s1584_s20 = smov (!%p191_p5, %s190_s20), 3  ;;  %vm292_vm0 = vcmask 1043456   ;;  %vm288_vm1 = vcmask 195584   ;;  %s1586_s13 = smov (!%p199_p6, %s1329_s13), 1 }
   0xf   : > { %349 = vmatprep.mubr.bf16.mxu0 %v1343_v0  ;;  %390 = vmatprep.mubr.bf16.mxu1 %v1343_v0  ;;  %s1215_s23 = smul.u32 120, %s1584_s20  ;;  %v227_v20 = vld [vmem:[%s1569_s0] sm:$0xf]  ;;  %v1163_v45 = vld [vmem:[%s1569_s0 + $0x4] sm:$0xf]  ;;  %s1588_s6 = smov (!%p201_p7, %s1136_s6), 15 }
  0x10   : > { %1257 = vset.pattern.permute.xlu0 %v1343_v0  ;;  %v1188_v55 = vld [vmem:[%s1569_s0 + $0x8] sm:$0xf]  ;;  %s1137_s7 = sshll.u32 %s1586_s13, 4 }
  0x11   : > { %212 = vperm.xlu0 %1257, %v209_v1   ;;  %s1409_s26 = scalar_lea.vmem %s1571_s2, %s1215_s23  ;;  %s204_s8 = sadd.s32 %s1137_s7, %s1588_s6 }
  0x12   : > { %v223_v2 = vld [vmem:[%s1409_s26 + $0x50] sm:$0xff]  ;;  %v224_v3 = vld [vmem:[%s1409_s26 + $0x58] sm:$0xff]  ;;  %v1262_v8 = vld [vmem:[%s1409_s26 + $0x4] ss:$40 sps:$4 sm:$0xff]   ;;  %s1138_s9 = sshll.u32 %s204_s8, 3 }
  0x13   : > { %v1148_v4 = vcombine.high %v223_v2, %v223_v2  ;;  %v1413_v5 = vcombine.high %v224_v3, %v224_v3  ;;  %v1147_v6 = vcombine.low %v223_v2, %v223_v2  ;;  %v1149_v7 = vcombine.low %v224_v3, %v224_v3  ;;  %v1417_v9 = vld [vmem:[%s1409_s26 + $0xc] ss:$40 sps:$4 sm:$0xff]   ;;  %v1266_v12 = vld [vmem:[%s1409_s26] ss:$40 sps:$4 sm:$0xff]   ;;  %v1456_v24 = vld [vmem:[%s1409_s26 + $0x1c] ss:$40 sps:$4 sm:$0xff]   ;;  %s1544_s12 = scalar_lea.vmem %s1572_s3, %s1138_s9 }
  0x14   : > { %v225_v13 = vld [vmem:[%s1409_s26 + $0x60] sm:$0xff]  ;;  %v226_v14 = vld [vmem:[%s1409_s26 + $0x68] sm:$0xff]  ;;  %v1443_v21 = vld [vmem:[%s1409_s26 + $0x14] ss:$40 sps:$4 sm:$0xff]  }
  0x15   : > { %1155 = vmatprep.subr.msk.bf16.mxu0 %vm292_vm0, %v1148_v4  ;;  %1157 = vmatprep.subr.msk.bf16.mxu1 %vm292_vm0, %v1413_v5  ;;  %v294_v10 = vsel %vm292_vm0, %v1147_v6, 0  ;;  %v1424_v11 = vsel %vm292_vm0, %v1149_v7, 0  ;;  %v1431_v15 = vld [vmem:[%s1409_s26 + $0x8] ss:$40 sps:$4 sm:$0xff]   ;;  %v1433_v16 = vcombine.high %v225_v13, %v225_v13  ;;  %v1436_v17 = vcombine.high %v226_v14, %v226_v14  ;;  %v497_v25 = vld [vmem:[%s1409_s26 + $0x54] sm:$0xff]  ;;  %v498_v26 = vld [vmem:[%s1409_s26 + $0x5c] sm:$0xff] }
  0x16   : > { %330 = vmatpush1.bf16.msra.mxu0 %v294_v10  ;;  %371 = vmatpush1.bf16.msra.mxu1 %v1424_v11  ;;  %v1151_v18 = vcombine.low %v225_v13, %v225_v13  ;;  %v1153_v19 = vcombine.low %v226_v14, %v226_v14  ;;  %v1463_v27 = vld [vmem:[%s1409_s26 + $0x10] ss:$40 sps:$4 sm:$0xff]   ;;  %v1173_v29 = vcombine.high %v497_v25, %v497_v25  ;;  %v499_v37 = vld [vmem:[%s1409_s26 + $0x64] sm:$0xff]  ;;  %v1285_v40 = vld [vmem:[%s1409_s26 + $0xc] ss:$40 sps:$4 sm:$0xff]  }
  0x17   : > { %331 = vmatprep.subr.bf16.mxu0 %v1262_v8  ;;  %372 = vmatprep.subr.bf16.mxu1 %v1417_v9  ;;  %v1468_v28 = vld [vmem:[%s1409_s26 + $0x18] ss:$40 sps:$4 sm:$0xff]   ;;  %v1175_v30 = vcombine.high %v498_v26, %v498_v26  ;;  %v1172_v31 = vcombine.low %v497_v25, %v497_v25  ;;  %v1174_v32 = vcombine.low %v498_v26, %v498_v26  ;;  %v1284_v33 = vld [vmem:[%s1409_s26 + $0x8] ss:$40 sps:$4 sm:$0xff]   ;;  %v1282_v39 = vld [vmem:[%s1409_s26 + $0x4] ss:$40 sps:$4 sm:$0xff]  }
  0x18   : > { %v1450_v22 = vsel %vm292_vm0, %v1151_v18, 0  ;;  %v1453_v23 = vsel %vm292_vm0, %v1153_v19, 0  ;;  %v1287_v36 = vld [vmem:[%s1409_s26 + $0x10] ss:$40 sps:$4 sm:$0xff]   ;;  %v1177_v41 = vcombine.high %v499_v37, %v499_v37  ;;  %v1176_v43 = vcombine.low %v499_v37, %v499_v37  ;;  %v1297_v49 = vld [vmem:[%s1409_s26 + $0x20] ss:$40 sps:$4 sm:$0xff]  }
  0x19   : > { %v567_v34 = vsel %vm292_vm0, %v1172_v31, 0  ;;  %v573_v35 = vsel %vm292_vm0, %v1174_v32, 0  ;;  %v500_v38 = vld [vmem:[%s1409_s26 + $0x6c] sm:$0xff]  ;;  %v1294_v48 = vld [vmem:[%s1409_s26 + $0x18] ss:$40 sps:$4 sm:$0xff]  }
  0x1a   : > { %332 = vmatpush1.bf16.msra.mxu0 %v1266_v12  ;;  %373 = vmatpush1.bf16.msra.mxu1 %v1431_v15  ;;  %v1179_v42 = vcombine.high %v500_v38, %v500_v38  ;;  %v1178_v44 = vcombine.low %v500_v38, %v500_v38  ;;  %v579_v46 = vsel %vm292_vm0, %v1176_v43, 0  ;;  %v1292_v50 = vld [vmem:[%s1409_s26 + $0x14] ss:$40 sps:$4 sm:$0xff]   ;;  %v1302_v57 = vld [vmem:[%s1409_s26 + $0x24] ss:$40 sps:$4 sm:$0xff]  }
  0x1b   : > { %1159 = vmatprep.subr.msk.bf16.mxu0 %vm292_vm0, %v1433_v16  ;;  %1161 = vmatprep.subr.msk.bf16.mxu1 %vm292_vm0, %v1436_v17  ;;  %v1295_v51 = vld [vmem:[%s1409_s26 + $0x1c] ss:$40 sps:$4 sm:$0xff]   ;;  %v773_v52 = vld [vmem:[%s1409_s26 + $0x70] sm:$0xff]  ;;  %v1300_v58 = vld [vmem:[%s1409_s26 + $0x20] ss:$40 sps:$4 sm:$0xff]  }
  0x1c   : > { %v585_v47 = vsel %vm292_vm0, %v1178_v44, 0  ;;  %v1204_v53 = vcombine.high %v773_v52, %v773_v52  ;;  %v1203_v54 = vcombine.low %v773_v52, %v773_v52 }
  0x1d   : > { %1156 = vmatmul.mubr.msk.bf16.vlgmr.msra.gmra.mxu0 %vm288_vm1, %v227_v20  ;;  %1158 = vmatmul.mubr.msk.bf16.vlgmr.msra.gmra.mxu1 %vm288_vm1, %v227_v20 }
  0x1e   : > { %412 = vmatpush1.bf16.msra.mxu0 %v1450_v22  ;;  %453 = vmatpush1.bf16.msra.mxu1 %v1453_v23  ;;  %v858_v56 = vsel %vm292_vm0, %v1203_v54, 0 }
  0x1f   : > { %413 = vmatprep.subr.bf16.mxu0 %v1443_v21  ;;  %454 = vmatprep.subr.bf16.mxu1 %v1456_v24 }
  0x20   : > { %431 = vmatprep.mubr.bf16.mxu0 %v1343_v0  ;;  %472 = vmatprep.mubr.bf16.mxu1 %v1343_v0 }
  0x22   : > { %414 = vmatpush1.bf16.msra.mxu0 %v1463_v27  ;;  %455 = vmatpush1.bf16.msra.mxu1 %v1468_v28 }
  0x23   : > { %1180 = vmatprep.subr.msk.bf16.mxu0 %vm292_vm0, %v1173_v29  ;;  %1182 = vmatprep.subr.msk.bf16.mxu1 %vm292_vm0, %v1175_v30 }
  0x25   : > { %1160 = vmatmul.mubr.msk.bf16.vlgmr.msra.gmra.mxu0 %vm288_vm1, %v227_v20  ;;  %1162 = vmatmul.mubr.msk.bf16.vlgmr.msra.gmra.mxu1 %vm288_vm1, %v227_v20 }
  0x26   : > { %603 = vmatpush1.bf16.msra.mxu0 %v567_v34  ;;  %644 = vmatpush1.bf16.msra.mxu1 %v573_v35 }
  0x27   : > { %604 = vmatprep.subr.bf16.mxu0 %v1284_v33  ;;  %645 = vmatprep.subr.bf16.mxu1 %v1287_v36 }
  0x28   : > { %622 = vmatprep.mubr.bf16.mxu0 %v1343_v0  ;;  %663 = vmatprep.mubr.bf16.mxu1 %v1343_v0 }
  0x2a   : > { %605 = vmatpush1.bf16.msra.mxu0 %v1282_v39  ;;  %646 = vmatpush1.bf16.msra.mxu1 %v1285_v40 }
  0x2b   : > { %1184 = vmatprep.subr.msk.bf16.mxu0 %vm292_vm0, %v1177_v41  ;;  %1186 = vmatprep.subr.msk.bf16.mxu1 %vm292_vm0, %v1179_v42 }
  0x2d   : > { %1181 = vmatmul.mubr.msk.bf16.vlgmr.msra.gmra.mxu0 %vm288_vm1, %v1163_v45  ;;  %1183 = vmatmul.mubr.msk.bf16.vlgmr.msra.gmra.mxu1 %vm288_vm1, %v1163_v45 }
  0x2e   : > { %685 = vmatpush1.bf16.msra.mxu0 %v579_v46  ;;  %726 = vmatpush1.bf16.msra.mxu1 %v585_v47 }
  0x2f   : > { %686 = vmatprep.subr.bf16.mxu0 %v1294_v48  ;;  %727 = vmatprep.subr.bf16.mxu1 %v1297_v49 }
  0x30   : > { %704 = vmatprep.mubr.bf16.mxu0 %v1343_v0  ;;  %745 = vmatprep.mubr.bf16.mxu1 %v1343_v0 }
  0x32   : > { %687 = vmatpush1.bf16.msra.mxu0 %v1292_v50  ;;  %728 = vmatpush1.bf16.msra.mxu1 %v1295_v51 }
  0x33   : > { %1205 = vmatprep.subr.msk.bf16.mxu0 %vm292_vm0, %v1413_v5  ;;  %1207 = vmatprep.subr.msk.bf16.mxu1 %vm292_vm0, %v1433_v16 }
  0x35   : > { %1185 = vmatmul.mubr.msk.bf16.vlgmr.msra.gmra.mxu0 %vm288_vm1, %v1163_v45  ;;  %1187 = vmatmul.mubr.msk.bf16.vlgmr.msra.gmra.mxu1 %vm288_vm1, %v1163_v45 }
  0x36   : > { %876 = vmatpush1.bf16.msra.mxu0 %v1424_v11  ;;  %917 = vmatpush1.bf16.msra.mxu1 %v1450_v22 }
  0x37   : > { %877 = vmatprep.subr.bf16.mxu0 %v1417_v9  ;;  %918 = vmatprep.subr.bf16.mxu1 %v1443_v21 }
  0x38   : > { %895 = vmatprep.mubr.bf16.mxu0 %v1343_v0  ;;  %936 = vmatprep.mubr.bf16.mxu1 %v1343_v0 }
  0x3a   : > { %878 = vmatpush1.bf16.msra.mxu0 %v1431_v15  ;;  %919 = vmatpush1.bf16.msra.mxu1 %v1463_v27 }
  0x3b   : > { %1209 = vmatprep.subr.msk.bf16.mxu0 %vm292_vm0, %v1436_v17  ;;  %1211 = vmatprep.subr.msk.bf16.mxu1 %vm292_vm0, %v1204_v53 }
  0x3d   : > { %1206 = vmatmul.mubr.msk.bf16.vlgmr.msra.gmra.mxu0 %vm288_vm1, %v1188_v55  ;;  %1208 = vmatmul.mubr.msk.bf16.vlgmr.msra.gmra.mxu1 %vm288_vm1, %v1188_v55 }
  0x3e   : > { %958 = vmatpush1.bf16.msra.mxu0 %v1453_v23  ;;  %999 = vmatpush1.bf16.msra.mxu1 %v858_v56 }
  0x3f   : > { %959 = vmatprep.subr.bf16.mxu0 %v1456_v24  ;;  %1000 = vmatprep.subr.bf16.mxu1 %v1302_v57 }
  0x40   : > { %977 = vmatprep.mubr.bf16.mxu0 %v1343_v0  ;;  %1018 = vmatprep.mubr.bf16.mxu1 %v1343_v0 }
  0x42   : > { %960 = vmatpush1.bf16.msra.mxu0 %v1468_v28  ;;  %1001 = vmatpush1.bf16.msra.mxu1 %v1300_v58 }
  0x45   : > { %1210 = vmatmul.mubr.msk.bf16.vlgmr.msra.gmra.mxu0 %vm288_vm1, %v1188_v55  ;;  %1212 = vmatmul.mubr.msk.bf16.vlgmr.msra.gmra.mxu1 %vm288_vm1, %v1188_v55 }
  0x8c   : > { %v213_v21 = vpop.permute.xlu0 %212 }
  0xdd   : > { %v351_v59 = vpop.f32.mrf.mxu0  ;;  %v392_v60 = vpop.f32.mrf.mxu1 }
  0xde   : > { %v481_v26 = vadd.f32 %v351_v59, %v213_v21  ;;  %v483_v27 = vadd.f32 %v392_v60, %v213_v21 }
  0xdf   : > { %v353_v61 = vpop.f32.mrf.mxu0  ;;  %v394_v62 = vpop.f32.mrf.mxu1 }
  0xe0   : > { %v482_v30 = vadd.f32 %v353_v61, %v213_v21  ;;  %v484_v31 = vadd.f32 %v394_v62, %v213_v21 }
  0xe1   : > { %v355_v63 = vpop.f32.mrf.mxu0  ;;  %v396_v1 = vpop.f32.mrf.mxu1 }
  0xe3   : > { %v356_v2 = vpop.f32.mrf.mxu0  ;;  %v397_v3 = vpop.f32.mrf.mxu1 }
  0xe5   : > { %v433_v4 = vpop.f32.mrf.mxu0  ;;  %v474_v0 = vpop.f32.mrf.mxu1 }
  0xe6   : > { %v485_v46 = vadd.f32 %v433_v4, %v213_v21  ;;  %v487_v47 = vadd.f32 %v474_v0, %v213_v21 }
  0xe7   : > { %v435_v5 = vpop.f32.mrf.mxu0  ;;  %v476_v6 = vpop.f32.mrf.mxu1 }
  0xe8   : > { %v486_v50 = vadd.f32 %v435_v5, %v213_v21  ;;  %v488_v51 = vadd.f32 %v476_v6, %v213_v21 }
  0xe9   : > { %v437_v7 = vpop.f32.mrf.mxu0  ;;  %v478_v8 = vpop.f32.mrf.mxu1 }
  0xeb   : > { %v438_v9 = vpop.f32.mrf.mxu0  ;;  %v479_v10 = vpop.f32.mrf.mxu1 }
  0xed   : > { %v624_v11 = vpop.f32.mrf.mxu0  ;;  %v665_v12 = vpop.f32.mrf.mxu1 }
  0xee   : > { %v754_v32 = vadd.f32 %v624_v11, %v481_v26  ;;  %v756_v33 = vadd.f32 %v665_v12, %v483_v27 }
  0xef   : > { %v626_v13 = vpop.f32.mrf.mxu0  ;;  %v667_v14 = vpop.f32.mrf.mxu1 }
  0xf0   : > { %v755_v36 = vadd.f32 %v626_v13, %v482_v30  ;;  %v757_v37 = vadd.f32 %v667_v14, %v484_v31 }
  0xf1   : > { %v628_v15 = vpop.f32.mrf.mxu0  ;;  %v669_v16 = vpop.f32.mrf.mxu1 }
  0xf3   : > { %v629_v17 = vpop.f32.mrf.mxu0  ;;  %v670_v18 = vpop.f32.mrf.mxu1 }
  0xf5   : > { %v706_v19 = vpop.f32.mrf.mxu0  ;;  %v747_v20 = vpop.f32.mrf.mxu1 }
  0xf6   : > { %v758_v52 = vadd.f32 %v706_v19, %v485_v46  ;;  %v760_v53 = vadd.f32 %v747_v20, %v487_v47 }
  0xf7   : > { %v708_v22 = vpop.f32.mrf.mxu0  ;;  %v749_v23 = vpop.f32.mrf.mxu1 }
  0xf8   : > { %v759_v56 = vadd.f32 %v708_v22, %v486_v50  ;;  %v761_v57 = vadd.f32 %v749_v23, %v488_v51 }
  0xf9   : > { %v710_v24 = vpop.f32.mrf.mxu0  ;;  %v751_v25 = vpop.f32.mrf.mxu1 }
  0xfb   : > { %v711_v28 = vpop.f32.mrf.mxu0  ;;  %v752_v29 = vpop.f32.mrf.mxu1 }
  0xfd   : > { %v897_v34 = vpop.f32.mrf.mxu0  ;;  %v938_v35 = vpop.f32.mrf.mxu1 }
  0xfe   : > { %v1027_v38 = vadd.f32 %v897_v34, %v754_v32  ;;  %v1029_v39 = vadd.f32 %v938_v35, %v756_v33 }
  0xff   : > { %v899_v40 = vpop.f32.mrf.mxu0  ;;  %v940_v41 = vpop.f32.mrf.mxu1 }
 0x100   : > { %1035 = vst [vmem:[%s1544_s12] sm:$0xff] %v1027_v38  ;;  %1037 = vst [vmem:[%s1544_s12 + $0x10] sm:$0xff] %v1029_v39  ;;  %v1028_v42 = vadd.f32 %v899_v40, %v755_v36  ;;  %v1030_v43 = vadd.f32 %v940_v41, %v757_v37 }
 0x101   : > { %v901_v44 = vpop.f32.mrf.mxu0  ;;  %v942_v45 = vpop.f32.mrf.mxu1 }
 0x102   : > { %1036 = vst [vmem:[%s1544_s12 + $0x8] sm:$0xff] %v1028_v42  ;;  %1038 = vst [vmem:[%s1544_s12 + $0x18] sm:$0xff] %v1030_v43 }
 0x103   : > { %v902_v48 = vpop.f32.mrf.mxu0  ;;  %v943_v49 = vpop.f32.mrf.mxu1 }
 0x105   : > { %v979_v54 = vpop.f32.mrf.mxu0  ;;  %v1020_v55 = vpop.f32.mrf.mxu1 }
 0x106   : > { %v1031_v58 = vadd.f32 %v979_v54, %v758_v52  ;;  %v1033_v59 = vadd.f32 %v1020_v55, %v760_v53 }
 0x107   : > { %v981_v60 = vpop.f32.mrf.mxu0  ;;  %v1022_v61 = vpop.f32.mrf.mxu1 }
 0x108   : > { %1039 = vst [vmem:[%s1544_s12 + $0x20] sm:$0xff] %v1031_v58  ;;  %1041 = vst [vmem:[%s1544_s12 + $0x30] sm:$0xff] %v1033_v59  ;;  %v1032_v62 = vadd.f32 %v981_v60, %v759_v56  ;;  %v1034_v63 = vadd.f32 %v1022_v61, %v761_v57 }
 0x109   : > { %v983_v1 = vpop.f32.mrf.mxu0  ;;  %v1024_v2 = vpop.f32.mrf.mxu1 }
 0x10a   : > { %1040 = vst [vmem:[%s1544_s12 + $0x28] sm:$0xff] %v1032_v62  ;;  %1042 = vst [vmem:[%s1544_s12 + $0x38] sm:$0xff] %v1034_v63 }
 0x10b   : > { %v984_v3 = vpop.f32.mrf.mxu0  ;;  %v1025_v4 = vpop.f32.mrf.mxu1 }
 0x10c PF: > { %s13_s16 = sadd.s32 1, %s1341_s16   ;;  %s1573_s12 = smov %s1333_s14 }
 0x10d   : > { %p10_p8 = scmp.ge.s32.totalorder %s13_s16, 6   ;;  %s1574_s13 = smov %s1337_s15 }
 0x10e   : > { %s1575_s14 = smov %s1578_s17  ;;  %s1576_s15 = smov %s1582_s18 }
 0x10f   :  { %12 = sbr.rel (!%p10_p8) target bundleno = 3 (0x3), region = 64 }

</bundles_post_ra>
